<compile_context>
chip_gen: v7x
topology: tpu7x:2x2x1
jax: 0.10.0
libtpu: 0.0.40
codegen_flags: <defaults>
</compile_context>

<pallas_src>
import jax
import jax.numpy as jnp
from jax.experimental import pallas as pl
from jax.experimental.pallas import tpu as pltpu


def _epidemics_gnn_kernel(x_ref, idx_ref, slab_ref, out_ref):
    f32 = jnp.float32
    N = x_ref.shape[0]
    E = idx_ref.shape[1]
    S = out_ref.shape[1]
    H = slab_ref.shape[1]

    # ---- unpack the consolidated parameter slab (static ref slices) -------
    w0 = slab_ref[0:1, :]              # folded input_proj->GAT.W weight [1,H]
    b0 = slab_ref[1:2, :]              # folded bias [1,H]
    a_r = slab_ref[2:3, :]             # attention vector (row half)  [1,H]
    a_c = slab_ref[3:4, :]             # attention vector (col half)  [1,H]
    b1 = slab_ref[4:5, :]              # MLP hidden bias [1,H]
    b2 = slab_ref[5:6, :]              # MLP out bias, first S lanes valid
    b_a = slab_ref[6:7, 0:1]           # attention bias [1,1]
    w1 = slab_ref[8:8 + H, :]          # [H,H]   (sublane-aligned at row 8)
    w2t = slab_ref[8 + H:8 + H + S, :]  # [S,H]  (w2 transposed)

    # ---- xg = GAT.W(input_proj(x)) ----------------------------------------
    # x is [N,1]; the two folded linears collapse to a rank-1 broadcast done
    # entirely on the VPU (no K=1 MXU round trip).
    xg = x_ref[...] * w0 + b0                                   # [N,H]

    # ---- gather/scatter masks from the int32 edge ids ---------------------
    # idx slab: row 0 = row ids, row 1 = col ids (lane-major [1,E]);
    # rows 8..8+E, lane 0 = col ids as a column ([E,1]), so the scatter mask
    # is built already in the orientation the MXU wants.
    # TODO(synk): for large E*N graphs this dense-mask formulation should be
    # replaced by a tiled gather/scatter with scalar-prefetched indices.
    row_ids = idx_ref[0:1, :]                                   # [1,E]
    col_ids = idx_ref[1:2, :]                                   # [1,E]
    col_ids_t = idx_ref[8:8 + E, 0:1]                           # [E,1]

    iota_ne = jax.lax.broadcasted_iota(jnp.int32, (N, E), 0)
    g_row = (iota_ne == row_ids).astype(f32)                    # [N,E]
    g_col = (iota_ne == col_ids).astype(f32)                    # [N,E]
    iota_en = jax.lax.broadcasted_iota(jnp.int32, (E, N), 1)
    g_col_t = (iota_en == col_ids_t).astype(f32)                # [E,N]

    # ---- attention logits, lane-major over edges ---------------------------
    # b_a folded into the row score (each edge selects exactly one row), and
    # the two sublane reductions fused into a single axis-0 (XLU) reduce.
    score_r = jnp.sum(xg * a_r, axis=-1, keepdims=True) + b_a   # [N,1]
    score_c = jnp.sum(xg * a_c, axis=-1, keepdims=True)         # [N,1]
    e_att = jnp.sum(g_row * score_r + g_col * score_c,
                    axis=0, keepdims=True)                      # [1,E]
    e_att = jnp.where(e_att > 0, e_att, 0.2 * e_att)            # LeakyReLU(0.2)

    # softmax over ALL edges (== F.softmax(alpha, dim=0)); exact division to
    # stay within the 1e-5 tolerance (no approx reciprocal).
    p = jnp.exp(e_att - jnp.max(e_att, axis=-1, keepdims=True))
    alpha = p / jnp.sum(p, axis=-1, keepdims=True)              # [1,E]

    # ---- out.index_add_(0, row, alpha * xg[col]) ---------------------------
    # Two clean [M,K]@[K,N] MXU contractions, no transposed operand and no
    # [N,N] intermediate:
    #   xg_col[e,:] = xg[col[e],:]        (gather)
    #   h[n,:]      = sum_e alpha[e] * (row[e]==n) * xg_col[e,:]   (scatter)
    xg_col = jnp.dot(g_col_t, xg, preferred_element_type=f32)       # [E,H]
    h = jnp.dot(g_row * alpha, xg_col, preferred_element_type=f32)  # [N,H]

    # ---- MLP head: Linear -> ReLU -> Linear -> softmax(dim=-1) -------------
    h1 = jnp.maximum(jnp.dot(h, w1, preferred_element_type=f32) + b1, 0.0)

    # num_states is tiny (2): per-state VPU dot against w2^T rows instead of
    # an MXU pass that would produce only 2 output lanes.
    logits = jnp.concatenate(
        [jnp.sum(h1 * w2t[s:s + 1, :], axis=-1, keepdims=True) + b2[0:1, s:s + 1]
         for s in range(S)],
        axis=-1)                                                 # [N,S]

    ez = jnp.exp(logits - jnp.max(logits, axis=-1, keepdims=True))
    out_ref[...] = ez / jnp.sum(ez, axis=-1, keepdims=True)


def stochastic_epidemics_gnn(x, edge_index, params):
    """x: [N, 1] float32, edge_index: [2, E] int32 -> [N, num_states] float32."""
    N = x.shape[0]
    E = edge_index.shape[1]
    H = params["w_gat"].shape[1]
    S = params["w2"].shape[1]
    assert S <= H, "num_states must fit in one slab row"

    # Fold input_proj into the GAT linear (exact reassociation within f32).
    w0 = params["w_in"] @ params["w_gat"]                        # [1,H]
    b0 = params["b_in"] @ params["w_gat"] + params["b_gat"]      # [1,H]

    # One f32 parameter slab: 8 vector rows, then w1 (sublane-aligned at
    # row 8), then w2^T.  A single lane-dense DMA instead of many tiny ones.
    slab = jnp.zeros((8 + H + S, H), jnp.float32)
    slab = slab.at[0].set(w0[0])
    slab = slab.at[1].set(b0[0])
    slab = slab.at[2].set(params["a_row"][:, 0])
    slab = slab.at[3].set(params["a_col"][:, 0])
    slab = slab.at[4].set(params["b1"][0])
    slab = slab.at[5, :S].set(params["b2"][0])
    slab = slab.at[6, 0].set(params["b_a"][0, 0])
    slab = slab.at[8:8 + H].set(params["w1"])
    slab = slab.at[8 + H:].set(params["w2"].T)

    # One int32 index slab carrying the edge list in both layouts the kernel
    # needs (lane-major [1,E] rows and a sublane-aligned [E,1] column), so no
    # in-kernel transpose is ever required.
    edges = edge_index.astype(jnp.int32)
    idx = jnp.zeros((8 + E, E), jnp.int32)
    idx = idx.at[0].set(edges[0])          # row ids, [1,E] view
    idx = idx.at[1].set(edges[1])          # col ids, [1,E] view
    idx = idx.at[8:, 0].set(edges[1])      # col ids, [E,1] view

    vmem = pltpu.MemorySpace.VMEM
    # Everything is tiny: no grid at all -> no pipeline scaffolding, whole
    # arrays resident in VMEM for the single kernel invocation.
    # TODO(synk): if this is ever run over many graphs / MC rollouts, add a
    # leading "parallel" batch grid axis to fill MXU rows and v7x's 2nd core.
    return pl.pallas_call(
        _epidemics_gnn_kernel,
        out_shape=jax.ShapeDtypeStruct((N, S), jnp.float32),
        in_specs=[pl.BlockSpec(memory_space=vmem)] * 3,
        out_specs=pl.BlockSpec(memory_space=vmem),
        compiler_params=pltpu.CompilerParams(
            vmem_limit_bytes=32 * 1024 * 1024),
    )(x.astype(jnp.float32), idx, slab)


def init_params(key, hidden_size=32, num_states=2):
    """Deterministic params mimicking PyTorch nn.Linear default init."""
    ks = jax.random.split(key, 5)

    def lin(k, fan_in, fan_out):
        kw, kb = jax.random.split(k)
        bound = 1.0 / jnp.sqrt(jnp.float32(fan_in))
        w = jax.random.uniform(kw, (fan_in, fan_out), jnp.float32, -bound, bound)
        b = jax.random.uniform(kb, (1, fan_out), jnp.float32, -bound, bound)
        return w, b

    w_in, b_in = lin(ks[0], 1, hidden_size)
    w_gat, b_gat = lin(ks[1], hidden_size, hidden_size)
    a_w, b_a = lin(ks[2], 2 * hidden_size, 1)        # Linear(2H, 1)
    w1, b1 = lin(ks[3], hidden_size, hidden_size)
    w2, b2 = lin(ks[4], hidden_size, num_states)

    return {
        "w_in": w_in, "b_in": b_in,
        "w_gat": w_gat, "b_gat": b_gat,
        "a_row": a_w[:hidden_size], "a_col": a_w[hidden_size:], "b_a": b_a,
        "w1": w1, "b1": b1, "w2": w2, "b2": b2,
    }


def reference_forward(x, edge_index, params):
    """Pure-JAX replica of the PyTorch forward (unfused, for verification)."""
    h0 = x @ params["w_in"] + params["b_in"]
    xg = h0 @ params["w_gat"] + params["b_gat"]
    row, col = edge_index[0], edge_index[1]
    x_row, x_col = xg[row], xg[col]
    e = x_row @ params["a_row"] + x_col @ params["a_col"] + params["b_a"]
    e = jnp.where(e > 0, e, 0.2 * e)
    alpha = jax.nn.softmax(e, axis=0)
    out = jnp.zeros_like(xg).at[row].add(alpha * x_col)
    h1 = jax.nn.relu(out @ params["w1"] + params["b1"])
    logits = h1 @ params["w2"] + params["b2"]
    return jax.nn.softmax(logits, axis=-1)


if __name__ == "__main__":
    key = jax.random.PRNGKey(0)
    k_param, k_x, k_row, k_col = jax.random.split(key, 4)

    N = 16        # nodes
    E = 32        # edges
    H = 32        # hidden size
    S = 2         # num_states

    params = init_params(k_param, hidden_size=H, num_states=S)
    x = jax.random.normal(k_x, (N, 1), dtype=jnp.float32)
    edge_index = jnp.stack([
        jax.random.randint(k_row, (E,), 0, N, dtype=jnp.int32),
        jax.random.randint(k_col, (E,), 0, N, dtype=jnp.int32),
    ])  # [2, E]

    out = stochastic_epidemics_gnn(x, edge_index, params)
    out = jax.block_until_ready(out)

    ref = reference_forward(x, edge_index, params)
    assert out.shape == (N, S), out.shape
    err = float(jnp.max(jnp.abs(out - ref)))
    assert jnp.allclose(out, ref, rtol=1e-5, atol=1e-5), f"max abs err {err}"

    print("KERNEL_OK")
</pallas_src>

<mosaic_0001>
module attributes {stable_mosaic.version = 11 : i64} {
  func.func @_epidemics_gnn_kernel(%arg0: memref<16x1xf32, #tpu.memory_space<vmem>>, %arg1: memref<40x32xi32, #tpu.memory_space<vmem>>, %arg2: memref<42x32xf32, #tpu.memory_space<vmem>>, %arg3: memref<16x2xf32, #tpu.memory_space<vmem>>) attributes {dimension_semantics = [], scalar_prefetch = 0 : i64, scratch_operands = 0 : i64, tpu.core_type = #tpu.core_type<tc>} {
    %c0 = arith.constant 0 : index
    %c0_0 = arith.constant 0 : index
    %0 = vector.load %arg2[%c0, %c0_0] : memref<42x32xf32, #tpu.memory_space<vmem>>, vector<1x32xf32>
    %c1 = arith.constant 1 : index
    %c0_1 = arith.constant 0 : index
    %1 = vector.load %arg2[%c1, %c0_1] : memref<42x32xf32, #tpu.memory_space<vmem>>, vector<1x32xf32>
    %c2 = arith.constant 2 : index
    %c0_2 = arith.constant 0 : index
    %2 = vector.load %arg2[%c2, %c0_2] : memref<42x32xf32, #tpu.memory_space<vmem>>, vector<1x32xf32>
    %c3 = arith.constant 3 : index
    %c0_3 = arith.constant 0 : index
    %3 = vector.load %arg2[%c3, %c0_3] : memref<42x32xf32, #tpu.memory_space<vmem>>, vector<1x32xf32>
    %c4 = arith.constant 4 : index
    %c0_4 = arith.constant 0 : index
    %4 = vector.load %arg2[%c4, %c0_4] : memref<42x32xf32, #tpu.memory_space<vmem>>, vector<1x32xf32>
    %c5 = arith.constant 5 : index
    %c0_5 = arith.constant 0 : index
    %5 = vector.load %arg2[%c5, %c0_5] : memref<42x32xf32, #tpu.memory_space<vmem>>, vector<1x32xf32>
    %c6 = arith.constant 6 : index
    %c0_6 = arith.constant 0 : index
    %6 = vector.load %arg2[%c6, %c0_6] : memref<42x32xf32, #tpu.memory_space<vmem>>, vector<1x1xf32>
    %c8 = arith.constant 8 : index
    %c0_7 = arith.constant 0 : index
    %7 = vector.load %arg2[%c8, %c0_7] : memref<42x32xf32, #tpu.memory_space<vmem>>, vector<32x32xf32>
    %c40 = arith.constant 40 : index
    %c0_8 = arith.constant 0 : index
    %8 = vector.load %arg2[%c40, %c0_8] : memref<42x32xf32, #tpu.memory_space<vmem>>, vector<2x32xf32>
    %c0_9 = arith.constant 0 : index
    %c0_10 = arith.constant 0 : index
    %9 = vector.load %arg0[%c0_9, %c0_10] : memref<16x1xf32, #tpu.memory_space<vmem>>, vector<16x1xf32>
    %10 = vector.broadcast %9 : vector<16x1xf32> to vector<16x32xf32>
    %11 = vector.broadcast %0 : vector<1x32xf32> to vector<16x32xf32>
    %12 = arith.mulf %10, %11 : vector<16x32xf32>
    %13 = vector.broadcast %1 : vector<1x32xf32> to vector<16x32xf32>
    %14 = arith.addf %12, %13 : vector<16x32xf32>
    %c0_11 = arith.constant 0 : index
    %c0_12 = arith.constant 0 : index
    %15 = vector.load %arg1[%c0_11, %c0_12] : memref<40x32xi32, #tpu.memory_space<vmem>>, vector<1x32xi32>
    %c1_13 = arith.constant 1 : index
    %c0_14 = arith.constant 0 : index
    %16 = vector.load %arg1[%c1_13, %c0_14] : memref<40x32xi32, #tpu.memory_space<vmem>>, vector<1x32xi32>
    %c8_15 = arith.constant 8 : index
    %c0_16 = arith.constant 0 : index
    %17 = vector.load %arg1[%c8_15, %c0_16] : memref<40x32xi32, #tpu.memory_space<vmem>>, vector<32x1xi32>
    %18 = tpu.iota {dimensions = array<i32: 0>} : vector<16x32xi32>
    %19 = vector.broadcast %15 : vector<1x32xi32> to vector<16x32xi32>
    %20 = arith.cmpi eq, %18, %19 : vector<16x32xi32>
    %21 = arith.extui %20 : vector<16x32xi1> to vector<16x32xi32>
    %22 = arith.sitofp %21 : vector<16x32xi32> to vector<16x32xf32>
    %23 = vector.broadcast %16 : vector<1x32xi32> to vector<16x32xi32>
    %24 = arith.cmpi eq, %18, %23 : vector<16x32xi32>
    %25 = arith.extui %24 : vector<16x32xi1> to vector<16x32xi32>
    %26 = arith.sitofp %25 : vector<16x32xi32> to vector<16x32xf32>
    %27 = tpu.iota {dimensions = array<i32: 1>} : vector<32x16xi32>
    %28 = vector.broadcast %17 : vector<32x1xi32> to vector<32x16xi32>
    %29 = arith.cmpi eq, %27, %28 : vector<32x16xi32>
    %30 = arith.extui %29 : vector<32x16xi1> to vector<32x16xi32>
    %31 = arith.sitofp %30 : vector<32x16xi32> to vector<32x16xf32>
    %32 = vector.broadcast %2 : vector<1x32xf32> to vector<16x32xf32>
    %33 = arith.mulf %14, %32 : vector<16x32xf32>
    %cst = arith.constant dense<0.000000e+00> : vector<16xf32>
    %34 = vector.multi_reduction <add>, %33, %cst [1] : vector<16x32xf32> to vector<16xf32>
    %35 = vector.shape_cast %34 : vector<16xf32> to vector<16x1xf32>
    %36 = vector.broadcast %6 : vector<1x1xf32> to vector<16x1xf32>
    %37 = arith.addf %35, %36 : vector<16x1xf32>
    %38 = vector.broadcast %3 : vector<1x32xf32> to vector<16x32xf32>
    %39 = arith.mulf %14, %38 : vector<16x32xf32>
    %cst_17 = arith.constant dense<0.000000e+00> : vector<16xf32>
    %40 = vector.multi_reduction <add>, %39, %cst_17 [1] : vector<16x32xf32> to vector<16xf32>
    %41 = vector.shape_cast %40 : vector<16xf32> to vector<16x1xf32>
    %42 = vector.broadcast %37 : vector<16x1xf32> to vector<16x32xf32>
    %43 = arith.mulf %22, %42 : vector<16x32xf32>
    %44 = vector.broadcast %41 : vector<16x1xf32> to vector<16x32xf32>
    %45 = arith.mulf %26, %44 : vector<16x32xf32>
    %46 = arith.addf %43, %45 : vector<16x32xf32>
    %cst_18 = arith.constant dense<0.000000e+00> : vector<32xf32>
    %47 = vector.multi_reduction <add>, %46, %cst_18 [0] : vector<16x32xf32> to vector<32xf32>
    %48 = vector.shape_cast %47 : vector<32xf32> to vector<1x32xf32>
    %cst_19 = arith.constant 0.000000e+00 : f32
    %49 = vector.broadcast %cst_19 : f32 to vector<1x32xf32>
    %50 = arith.cmpf ogt, %48, %49 : vector<1x32xf32>
    %cst_20 = arith.constant 2.000000e-01 : f32
    %51 = vector.broadcast %cst_20 : f32 to vector<1x32xf32>
    %52 = arith.mulf %51, %48 : vector<1x32xf32>
    %53 = arith.select %50, %48, %52 : vector<1x32xi1>, vector<1x32xf32>
    %cst_21 = arith.constant dense<0xFF800000> : vector<1xf32>
    %54 = vector.multi_reduction <maximumf>, %53, %cst_21 [1] : vector<1x32xf32> to vector<1xf32>
    %55 = vector.shape_cast %54 : vector<1xf32> to vector<1x1xf32>
    %56 = vector.broadcast %55 : vector<1x1xf32> to vector<1x32xf32>
    %57 = arith.subf %53, %56 : vector<1x32xf32>
    %58 = math.exp %57 : vector<1x32xf32>
    %cst_22 = arith.constant dense<0.000000e+00> : vector<1xf32>
    %59 = vector.multi_reduction <add>, %58, %cst_22 [1] : vector<1x32xf32> to vector<1xf32>
    %60 = vector.shape_cast %59 : vector<1xf32> to vector<1x1xf32>
    %61 = vector.broadcast %60 : vector<1x1xf32> to vector<1x32xf32>
    %62 = arith.divf %58, %61 : vector<1x32xf32>
    %cst_23 = arith.constant dense<0.000000e+00> : vector<32x32xf32>
    %63 = tpu.matmul %31, %14, %cst_23 {dimension_numbers = #tpu.dot_dimension_numbers<[1], [0], [0], [1], [0, 0, 1, 1], [], []>} : vector<32x16xf32>, vector<16x32xf32>, vector<32x32xf32> -> vector<32x32xf32>
    %64 = vector.broadcast %62 : vector<1x32xf32> to vector<16x32xf32>
    %65 = arith.mulf %22, %64 : vector<16x32xf32>
    %cst_24 = arith.constant dense<0.000000e+00> : vector<16x32xf32>
    %66 = tpu.matmul %65, %63, %cst_24 {dimension_numbers = #tpu.dot_dimension_numbers<[1], [0], [0], [1], [0, 0, 1, 1], [], []>} : vector<16x32xf32>, vector<32x32xf32>, vector<16x32xf32> -> vector<16x32xf32>
    %cst_25 = arith.constant dense<0.000000e+00> : vector<16x32xf32>
    %67 = tpu.matmul %66, %7, %cst_25 {dimension_numbers = #tpu.dot_dimension_numbers<[1], [0], [0], [1], [0, 0, 1, 1], [], []>} : vector<16x32xf32>, vector<32x32xf32>, vector<16x32xf32> -> vector<16x32xf32>
    %68 = vector.broadcast %4 : vector<1x32xf32> to vector<16x32xf32>
    %69 = arith.addf %67, %68 : vector<16x32xf32>
    %cst_26 = arith.constant 0.000000e+00 : f32
    %70 = vector.broadcast %cst_26 : f32 to vector<16x32xf32>
    %71 = arith.maximumf %69, %70 : vector<16x32xf32>
    %72 = vector.extract_strided_slice %8 {offsets = [0, 0], sizes = [1, 32], strides = [1, 1]} : vector<2x32xf32> to vector<1x32xf32>
    %73 = vector.broadcast %72 : vector<1x32xf32> to vector<16x32xf32>
    %74 = arith.mulf %71, %73 : vector<16x32xf32>
    %cst_27 = arith.constant dense<0.000000e+00> : vector<16xf32>
    %75 = vector.multi_reduction <add>, %74, %cst_27 [1] : vector<16x32xf32> to vector<16xf32>
    %76 = vector.shape_cast %75 : vector<16xf32> to vector<16x1xf32>
    %77 = vector.extract_strided_slice %5 {offsets = [0, 0], sizes = [1, 1], strides = [1, 1]} : vector<1x32xf32> to vector<1x1xf32>
    %78 = vector.broadcast %77 : vector<1x1xf32> to vector<16x1xf32>
    %79 = arith.addf %76, %78 : vector<16x1xf32>
    %80 = vector.extract_strided_slice %8 {offsets = [1, 0], sizes = [1, 32], strides = [1, 1]} : vector<2x32xf32> to vector<1x32xf32>
    %81 = vector.broadcast %80 : vector<1x32xf32> to vector<16x32xf32>
    %82 = arith.mulf %71, %81 : vector<16x32xf32>
    %cst_28 = arith.constant dense<0.000000e+00> : vector<16xf32>
    %83 = vector.multi_reduction <add>, %82, %cst_28 [1] : vector<16x32xf32> to vector<16xf32>
    %84 = vector.shape_cast %83 : vector<16xf32> to vector<16x1xf32>
    %85 = vector.extract_strided_slice %5 {offsets = [0, 1], sizes = [1, 1], strides = [1, 1]} : vector<1x32xf32> to vector<1x1xf32>
    %86 = vector.broadcast %85 : vector<1x1xf32> to vector<16x1xf32>
    %87 = arith.addf %84, %86 : vector<16x1xf32>
    %88 = tpu.concatenate %79, %87 in 1 : vector<16x1xf32>, vector<16x1xf32> -> vector<16x2xf32>
    %cst_29 = arith.constant dense<0xFF800000> : vector<16xf32>
    %89 = vector.multi_reduction <maximumf>, %88, %cst_29 [1] : vector<16x2xf32> to vector<16xf32>
    %90 = vector.shape_cast %89 : vector<16xf32> to vector<16x1xf32>
    %91 = vector.broadcast %90 : vector<16x1xf32> to vector<16x2xf32>
    %92 = arith.subf %88, %91 : vector<16x2xf32>
    %93 = math.exp %92 : vector<16x2xf32>
    %cst_30 = arith.constant dense<0.000000e+00> : vector<16xf32>
    %94 = vector.multi_reduction <add>, %93, %cst_30 [1] : vector<16x2xf32> to vector<16xf32>
    %95 = vector.shape_cast %94 : vector<16xf32> to vector<16x1xf32>
    %96 = vector.broadcast %95 : vector<16x1xf32> to vector<16x2xf32>
    %97 = arith.divf %93, %96 : vector<16x2xf32>
    %c0_31 = arith.constant 0 : index
    %c0_32 = arith.constant 0 : index
    %98 = vector.load %arg3[%c0_31, %c0_32] : memref<16x2xf32, #tpu.memory_space<vmem>>, vector<16x2xf32>
    tpu.vector_store %arg3[%c0_31, %c0_32], %97 {strides = array<i32>} : memref<16x2xf32, #tpu.memory_space<vmem>>, vector<16x2xf32>,
    return
  }
}

</mosaic_0001>

<bundles_post_ra>
// kernel: tpu_custom_call.1
= control target key start
LH: loop header
LB: loop body
LE: loop exit
PB: predicated region body
PF: predicated region fallthrough
CT: control target
= control target key end

     0   :  { %v618_v0 = vmov 0   ;;  %v56_v10 = vlaneseq  ;;  %vm111_vm0 = vcmask 261120   ;;  %vm175_vm1 = vcmask 130048   ;;  %s739_s0 = inlined_call_operand.vmem [shape: f32[16,1], index: 0, kind: input, shape index: {}]   ;;  %s740_s1 = inlined_call_operand.vmem [shape: s32[40,32], index: 1, kind: input, shape index: {}]   ;;  %s741_s2 = inlined_call_operand.vmem [shape: f32[42,32], index: 2, kind: input, shape index: {}]   ;;  %s742_s3 = inlined_call_operand.vmem [shape: f32[16,2], index: 3, kind: output, shape index: {}]  }
   0x1   :  { %604 = vset.pattern.permute.xlu0 %v618_v0  ;;  %v26_v1 = vld [vmem:[%s739_s0] sm:$0xff]  ;;  %605 = vset.pattern.permute.xlu1 %v618_v0  ;;  %v27_v2 = vld [vmem:[%s739_s0 + $0x8] sm:$0xff]  ;;  %v54_v4 = vld [vmem:[%s740_s1 + $0x18] sm:$0xff]  ;;  %v619_v25 = vmov 0.0   ;;  %vm475_vm11 = vcmask 7168   ;;  %vm478_vm12 = vcmask 15360  }
   0x2   :  { %30 = vperm.xlu0 %604, %v26_v1   ;;  %v52_v3 = vld [vmem:[%s740_s1 + $0x8] sm:$0xff]  ;;  %v55_v5 = vld [vmem:[%s740_s1 + $0x20] sm:$0xff]  ;;  %v80_v18 = vand.u32 127, %v56_v10  ;;  %v53_v28 = vld [vmem:[%s740_s1 + $0x10] sm:$0xff]  ;;  %v684_v43 = vshrl.u32 %v56_v10, 7 }
   0x3   :  { %v507_v6 = vld [vmem:[%s741_s2] ss:$0 sm:$0xff]  ;;  %v508_v7 = vld [vmem:[%s741_s2 + $0x1] ss:$0 sm:$0xff]  ;;  %v521_v11 = vld [vmem:[%s741_s2 + $0x3] ss:$0 sm:$0xff] }
   0x4   :  { %v519_v12 = vld [vmem:[%s741_s2 + $0x2] ss:$0 sm:$0xff]  ;;  %v520_v31 = vld [vmem:[%s741_s2 + $0x6] ss:$0 sm:$0xff]  ;;  %v509_v42 = vld [vmem:[%s740_s1] ss:$0 sm:$0xff] }
   0x5   :  { %v512_v44 = vld [vmem:[%s740_s1 + $0x1] ss:$0 sm:$0xff]  ;;  %v58_v45 = vadd.s32 8, %v684_v43  ;;  %vm63_vm6 = vcmp.eq.s32.totalorder %v684_v43, %v509_v42 }
   0x6   :  { %35 = vperm.xlu0 %604, %v27_v2   ;;  %vm73_vm7 = vcmp.eq.s32.totalorder %v684_v43, %v512_v44  ;;  %v510_v47 = vsel %vm63_vm6, 1.0, %v619_v25 }
   0x7   :  { %vm74_vm8 = vcmp.eq.s32.totalorder %v58_v45, %v512_v44  ;;  %vm64_vm9 = vcmp.eq.s32.totalorder %v58_v45, %v509_v42  ;;  %v513_v48 = vsel %vm73_vm7, 1.0, %v619_v25 }
   0x8   :  { %v514_v52 = vsel %vm74_vm8, 1.0, %v619_v25  ;;  %v511_v53 = vsel %vm64_vm9, 1.0, %v619_v25 }
   0xa   :  { %82 = vperm.xlu0 %604, %v52_v3  }
   0xe   :  { %88 = vperm.xlu0 %604, %v54_v4  }
  0x12   :  { %91 = vperm.xlu0 %604, %v55_v5  }
  0x81   :  { %v31_v8 = vpop.permute.xlu0 %30 }
  0x82   :  { %v42_v9 = vmul.f32 %v507_v6, %v31_v8 }
  0x84   :  { %v48_v13 = vadd.f32 %v508_v7, %v42_v9 }
  0x85   :  { %v36_v14 = vpop.permute.xlu0 %35 }
  0x86   :  { %v43_v15 = vmul.f32 %v507_v6, %v36_v14  ;;  %v128_v16 = vmul.f32 %v521_v11, %v48_v13  ;;  %v109_v17 = vmul.f32 %v519_v12, %v48_v13 }
  0x88   :  { %v49_v19 = vadd.f32 %v508_v7, %v43_v15  ;;  %v130_v20 = vsel %vm111_vm0, %v128_v16, 0.0  ;;  %v112_v21 = vsel %vm111_vm0, %v109_v17, 0.0 }
  0x89   :  { %131 = vadd.xlane.f32.xlu0 %v130_v20  ;;  %113 = vadd.xlane.f32.xlu1 %v112_v21  ;;  %v83_v22 = vpop.permute.xlu0 %82  ;;  %v22_v20 = vld [vmem:[%s741_s2 + $0x10] sm:$0xff]  ;;  %v23_v21 = vld [vmem:[%s741_s2 + $0x18] sm:$0xff] }
  0x8a   :  { %vm93_vm2 = vcmp.eq.s32.totalorder %v80_v18, %v83_v22  ;;  %v582_v23 = vpack.c.bf16 %v49_v19, %v48_v13  ;;  %v110_v24 = vmul.f32 %v519_v12, %v49_v19  ;;  %v129_v29 = vmul.f32 %v521_v11, %v49_v19  ;;  %v21_v19 = vld [vmem:[%s741_s2 + $0x8] sm:$0xff] }
  0x8b   :  { %v515_v26 = vsel %vm93_vm2, 1.0, %v619_v25  ;;  %v594_v22 = vpack.c.bf16 %v22_v20, %v21_v19 }
  0x8c   :  { %583 = vmatprep.subr.bf16.mxu0 %v582_v23  ;;  %554 = vmatprep.mubr.msk.f32.mxu0 %vm175_vm1, %v515_v26  ;;  %v115_v27 = vsel %vm111_vm0, %v110_v24, 0.0  ;;  %v133_v30 = vsel %vm111_vm0, %v129_v29, 0.0 }
  0x8d   :  { %585 = vmatpush3.bf16.msra.mxu0 %v582_v23  ;;  %116 = vadd.xlane.f32.xlu1 %v115_v27  ;;  %v89_v34 = vpop.permute.xlu0 %88  ;;  %v24_v23 = vld [vmem:[%s741_s2 + $0x20] sm:$0xff] }
  0x8e   :  { %vm95_vm3 = vcmp.eq.s32.totalorder %v80_v18, %v89_v34  ;;  %v598_v24 = vpack.c.bf16 %v24_v23, %v23_v21  ;;  %595 = vmatprep.subr.bf16.mxu0 %v594_v22  ;;  %v528_v34 = vld [vmem:[%s741_s2 + $0x4] ss:$0 sm:$0xff] }
  0x8f   :  { %v517_v40 = vsel %vm95_vm3, 1.0, %v619_v25 }
  0x91   :  { %v92_v37 = vpop.permute.xlu0 %91 }
  0x92   :  { %vm96_vm5 = vcmp.eq.s32.totalorder %v80_v18, %v92_v37 }
  0x93   :  { %v518_v41 = vsel %vm96_vm5, 1.0, %v619_v25 }
  0x9e   :  { %85 = vperm.xlu1 %605, %v53_v28  }
  0xc2   :  { %134 = vadd.xlane.f32.xlu1 %v133_v30 }
 0x116   :  { %v114_v32 = vpop.xlane.xlu1 %113  ;;  %v132_v46 = vpop.xlane.xlu0 %131 }
 0x117   :  { %v122_v33 = vadd.f32 %v520_v31, %v114_v32  ;;  %v148_v54 = vmul.f32 %v513_v48, %v132_v46  ;;  %v463_v32 = vsub.s32 1, %v684_v43 }
 0x119   :  { %138 = vperm.xlu0 %604, %v122_v33   ;;  %v445_v33 = vsub.s32 0, %v684_v43 }
 0x11a   :  { %v117_v35 = vpop.xlane.xlu1 %116 }
 0x11b   :  { %v123_v36 = vadd.f32 %v520_v31, %v117_v35  ;;  %v25_v35 = vld [vmem:[%s741_s2 + $0x28] sm:$0x3] }
 0x11d   :  { %143 = vperm.xlu1 %605, %v123_v36  }
 0x11e   :  { %v86_v38 = vpop.permute.xlu1 %85 }
 0x11f   :  { %vm94_vm4 = vcmp.eq.s32.totalorder %v80_v18, %v86_v38 }
 0x120   :  { %v516_v39 = vsel %vm94_vm4, 1.0, %v619_v25 }
 0x121   :  { %555 = vmatmul.mubr.msk.f32.vlgmr.msra.gmra.mrb[0].mxu0 %vm175_vm1, %v516_v39  ;;  %v464_v39 = vrot.slane %v25_v35, %v463_v32 }
 0x122   :  { %557 = vmatprep.mubr.msk.f32.mxu0 %vm175_vm1, %v517_v40  ;;  %597 = vmatpush3.bf16.msra.mxu0 %v594_v22  ;;  %v446_v40 = vrot.slane %v25_v35, %v445_v33 }
 0x123   :  { %599 = vmatprep.subr.bf16.mxu0 %v598_v24 }
 0x125   :  { %558 = vmatmul.mubr.msk.f32.gmra.mrb[2].mxu0 %vm175_vm1, %v518_v41 }
 0x126   :  { %601 = vmatpush3.bf16.msra.mxu0 %v598_v24 }
 0x14f   :  { %v135_v49 = vpop.xlane.xlu1 %134 }
 0x150   :  { %v149_v56 = vmul.f32 %v514_v52, %v135_v49  ;;  %v531_v52 = vld [vmem:[%s741_s2 + $0x5] ss:$0 sm:$0xff] }
 0x198   :  { %v139_v50 = vpop.permute.xlu0 %138 }
 0x199   :  { %v146_v51 = vmul.f32 %v510_v47, %v139_v50 }
 0x19b   :  { %v150_v57 = vadd.f32 %v148_v54, %v146_v51 }
 0x19c   :  { %v144_v55 = vpop.permute.xlu1 %143 }
 0x19d   :  { %v147_v58 = vmul.f32 %v511_v53, %v144_v55  ;;  %v152_v60 = vsel %vm111_vm0, %v150_v57, 0.0 }
 0x19f   :  { %v151_v59 = vadd.f32 %v149_v56, %v147_v58 }
 0x1a1   :  { %v153_v61 = vsel %vm111_vm0, %v151_v59, 0.0 }
 0x1a2   :  { %v154_v62 = vadd.f32 %v153_v61, %v152_v60 }
 0x1a4   :  { %v155_v63 = vrot.slane %v154_v62, 4 }
 0x1a6   :  { %v156_v0 = vadd.f32 %v155_v63, %v154_v62 }
 0x1a8   :  { %v157_v1 = vrot.slane %v156_v0, 2 }
 0x1aa   :  { %v158_v2 = vadd.f32 %v157_v1, %v156_v0 }
 0x1ac   :  { %v159_v3 = vrot.slane %v158_v2, 1 }
 0x1ae   :  { %v160_v4 = vadd.f32 %v159_v3, %v158_v2 }
 0x1b0   :  { %vm161_vm10 = vcmp.gt.f32.partialorder %v160_v4, 0.0  ;;  %v162_v5 = vmul.f32 0.2, %v160_v4 }
 0x1b2   :  { %v163_v6 = vsel %vm161_vm10, %v160_v4, %v162_v5 }
 0x1b3   :  { %v164_v7 = vsel %vm111_vm0, %v163_v6, -inf }
 0x1b4   :  { %165 = vmax.xlane.f32.xlu0 %v164_v7 }
 0x1f4   :  { %v556_v8 = vpop.f32.mrb[0].mxu0 }
 0x1f5   :  { %v254_v9 = vpop.f32.mrb[1].mxu0 }
 0x1f6   :  { %v586_v10 = vpack.c.bf16 %v556_v8, %v254_v9 }
 0x1f8   :  { %v559_v11 = vpop.f32.mrb[2].mxu0  ;;  %587 = vmatprep.subr.bf16.mxu1 %v586_v10 }
 0x1f9   :  { %v264_v12 = vpop.f32.mrb[3].mxu0  ;;  %589 = vmatpush3.bf16.msra.mxu1 %v586_v10 }
 0x1fa   :  { %v590_v13 = vpack.c.bf16 %v559_v11, %v264_v12 }
 0x1fc   :  { %591 = vmatprep.subr.bf16.mxu1 %v590_v13 }
 0x1fd   :  { %593 = vmatpush3.bf16.msra.mxu1 %v590_v13 }
 0x241   :  { %v166_v14 = vpop.xlane.xlu0 %165 }
 0x242   :  { %v167_v15 = vsub.f32 %v163_v6, %v166_v14 }
 0x244   :  { %v168_v16 = vmul.f32 1.442695, %v167_v15 }
 0x246   :  { %606 = vpow2.f32 %v168_v16 }
 0x250   :  { %v607_v17 = vpop.eup %606 }
 0x251   :  { %v170_v18 = vsel %vm111_vm0, %v607_v17, 0.0 }
 0x252   :  { %171 = vadd.xlane.f32.xlu1 %v170_v18 }
 0x2df   :  { %v172_v25 = vpop.xlane.xlu1 %171 }
 0x2e0   :  { %608 = vrcp.f32 %v172_v25 }
 0x2ea   :  { %v609_v26 = vpop.eup %608 }
 0x2eb   :  { %v174_v27 = vmul.f32 %v609_v26, %v607_v17 }
 0x2ed   :  { %v273_v28 = vmul.f32 %v510_v47, %v174_v27  ;;  %v274_v29 = vmul.f32 %v511_v53, %v174_v27 }
 0x2ef   :  { %568 = vmatprep.mubr.msk.f32.mxu1 %vm111_vm0, %v273_v28 }
 0x2f0   :  { %569 = vmatmul.mubr.msk.f32.vlgmr.msra.gmra.mrb[0].mxu1 %vm111_vm0, %v274_v29 }
 0x3c3   :  { %v570_v30 = vpop.f32.mrb[0].mxu1 }
 0x3c4   :  { %v347_v31 = vpop.f32.mrb[1].mxu1 }
 0x3c5   :  { %579 = vmatprep.mubr.msk.f32.mxu0 %vm111_vm0, %v347_v31 }
 0x3c6   :  { %580 = vmatmul.mubr.msk.f32.vlgmr.msra.gmra.mrb[4].mxu0 %vm111_vm0, %v570_v30 }
 0x499   :  { %v581_v36 = vpop.f32.mrb[4].mxu0 }
 0x49a   :  { %v438_v37 = vadd.f32 %v581_v36, %v528_v34  ;;  %v432_v38 = vpop.f32.mrb[5].mxu0 }
 0x49b   :  { %v433_v41 = vadd.f32 %v528_v34, %v432_v38 }
 0x49c   :  { %v442_v42 = vmax.f32 %v438_v37, 0.0 }
 0x49d   :  { %v441_v44 = vmax.f32 %v433_v41, 0.0 }
 0x49e   :  { %v466_v45 = vmul.f32 %v464_v39, %v442_v42  ;;  %v448_v46 = vmul.f32 %v446_v40, %v442_v42 }
 0x49f   :  { %v447_v48 = vmul.f32 %v446_v40, %v441_v44  ;;  %v465_v50 = vmul.f32 %v464_v39, %v441_v44 }
 0x4a0   :  { %v470_v43 = vsel %vm111_vm0, %v466_v45, 0.0  ;;  %v452_v47 = vsel %vm111_vm0, %v448_v46, 0.0 }
 0x4a1   :  { %471 = vadd.xlane.f32.xlu1 %v470_v43  ;;  %453 = vadd.xlane.f32.xlu0 %v452_v47  ;;  %v449_v49 = vsel %vm111_vm0, %v447_v48, 0.0  ;;  %v467_v51 = vsel %vm111_vm0, %v465_v50, 0.0 }
 0x4a5   :  { %450 = vadd.xlane.f32.xlu0 %v449_v49 }
 0x4a9   :  { %468 = vadd.xlane.f32.xlu0 %v467_v51 }
 0x52e   :  { %v472_v53 = vpop.xlane.xlu1 %471  ;;  %v454_v54 = vpop.xlane.xlu0 %453 }
 0x52f   :  { %v474_v55 = vadd.f32 %v531_v52, %v472_v53  ;;  %v460_v56 = vadd.f32 %v531_v52, %v454_v54 }
 0x531   :  { %v477_v57 = vsel %vm475_vm11, %v460_v56, %v474_v55 }
 0x532   :  { %v451_v58 = vpop.xlane.xlu0 %450  ;;  %v482_v59 = vsel %vm478_vm12, %v477_v57, -inf }
 0x533   :  { %483 = vmax.xlane.f32.xlu1 %v482_v59  ;;  %v459_v61 = vadd.f32 %v531_v52, %v451_v58 }
 0x536   :  { %v469_v60 = vpop.xlane.xlu0 %468 }
 0x537   :  { %v473_v62 = vadd.f32 %v531_v52, %v469_v60 }
 0x539   :  { %v476_v63 = vsel %vm475_vm11, %v459_v61, %v473_v62 }
 0x53a   :  { %v479_v0 = vsel %vm478_vm12, %v476_v63, -inf }
 0x53b   :  { %480 = vmax.xlane.f32.xlu0 %v479_v0 }
 0x5c0   :  { %v484_v1 = vpop.xlane.xlu1 %483 }
 0x5c1   :  { %v486_v2 = vsub.f32 %v477_v57, %v484_v1 }
 0x5c3   :  { %v489_v3 = vmul.f32 1.442695, %v486_v2 }
 0x5c5   :  { %610 = vpow2.f32 %v489_v3 }
 0x5c8   :  { %v481_v4 = vpop.xlane.xlu0 %480 }
 0x5c9   :  { %v485_v5 = vsub.f32 %v476_v63, %v481_v4 }
 0x5cb   :  { %v487_v6 = vmul.f32 1.442695, %v485_v5 }
 0x5cd   :  { %612 = vpow2.f32 %v487_v6 }
 0x5cf   :  { %v611_v7 = vpop.eup %610 }
 0x5d0   :  { %v494_v8 = vsel %vm478_vm12, %v611_v7, 0.0 }
 0x5d1   :  { %495 = vadd.xlane.f32.xlu1 %v494_v8 }
 0x5d7   :  { %v613_v9 = vpop.eup %612 }
 0x5d8   :  { %v491_v10 = vsel %vm478_vm12, %v613_v9, 0.0 }
 0x5d9   :  { %492 = vadd.xlane.f32.xlu0 %v491_v10 }
 0x65e   :  { %v496_v11 = vpop.xlane.xlu1 %495 }
 0x65f   :  { %614 = vrcp.f32 %v496_v11 }
 0x666   :  { %v493_v12 = vpop.xlane.xlu0 %492 }
 0x667   :  { %616 = vrcp.f32 %v493_v12 }
 0x669   :  { %v615_v13 = vpop.eup %614 }
 0x66a   :  { %v500_v14 = vmul.f32 %v615_v13, %v611_v7 }
 0x66c   :  { %502 = vst.msk [vmem:[%s742_s3 + $0x8] sm:$0xff] %vm478_vm12, %v500_v14 }
 0x671   :  { %v617_v15 = vpop.eup %616 }
 0x672   :  { %v498_v16 = vmul.f32 %v617_v15, %v613_v9 }
 0x674   :  { %501 = vst.msk [vmem:[%s742_s3] sm:$0xff] %vm478_vm12, %v498_v16 }

</bundles_post_ra>
